<compile_context>
chip_gen: v6e
topology: v6e:2x2x1
jax: 0.10.0
libtpu: 0.0.40
codegen_flags: <defaults>
</compile_context>

<pallas_src>
import functools

import jax
import jax.numpy as jnp
from jax.experimental import pallas as pl
from jax.experimental.pallas import tpu as pltpu


def _round_up(n, m):
    return ((n + m - 1) // m) * m


def classifier_kernel(patches_ref, wconv_ref, bconv_ref, whead_ref, bhead_ref,
                      logits_ref, acc_ref, *, inv_p):
    """One (batch-tile, spatial-tile) grid step.

    patches_ref : (TB, TP, Kp)  bf16  im2col patches for this tile
    wconv_ref   : (Kp, Cp)      bf16  conv weight   (resident across grid)
    bconv_ref   : (1, Cp)       f32
    whead_ref   : (Cp, Np)      bf16  head weight   (resident across grid)
    bhead_ref   : (1, Np)       f32
    logits_ref  : (TB, Np)      f32   output (written on last spatial tile)
    acc_ref     : (TB, Cp)      f32   running spatial sum of backbone features
    """
    pi = pl.program_id(1)

    # ---- init pooled-sum accumulator on the first spatial tile ----
    @pl.when(pi == 0)
    def _():
        acc_ref[...] = jnp.zeros_like(acc_ref)

    tb, tp, kp = patches_ref.shape

    # ---- backbone: conv as ONE tall MXU matmul (bf16 in, f32 acc) + bias/ReLU
    patches = patches_ref[...].reshape(tb * tp, kp)                # (TB*TP, Kp)
    feat = jnp.dot(patches, wconv_ref[...],
                   preferred_element_type=jnp.float32)             # (TB*TP, Cp) f32
    feat = jnp.maximum(feat + bconv_ref[...], 0.0)

    # ---- neck: stream the spatial sum into the VMEM accumulator ----
    acc_ref[...] += jnp.sum(feat.reshape(tb, tp, -1), axis=1)      # (TB, Cp)

    # ---- head: only on the last spatial tile (scale by 1/P, linear, bias) ----
    @pl.when(pi == pl.num_programs(1) - 1)
    def _():
        pooled = (acc_ref[...] * inv_p).astype(whead_ref.dtype)    # bf16 (TB, Cp)
        logits = jnp.dot(pooled, whead_ref[...],
                         preferred_element_type=jnp.float32) + bhead_ref[...]
        logits_ref[...] = logits.astype(logits_ref.dtype)


def im2col_3x3_same(x_nhwc):
    """Extract 3x3 'same' patches; glue code (plain JAX outside the kernel).
    # TODO(synk): an in-kernel halo-load im2col would cut HBM bytes ~9x for the
    # dominant operand; kept outside for clarity at these small shapes.
    """
    B, H, W, C = x_nhwc.shape
    xp = jnp.pad(x_nhwc, ((0, 0), (1, 1), (1, 1), (0, 0)))
    cols = []
    for di in range(3):
        for dj in range(3):
            cols.append(xp[:, di:di + H, dj:dj + W, :])
    patches = jnp.stack(cols, axis=-2)               # (B, H, W, 9, C)
    return patches.reshape(B, H * W, 9 * C)


def base_classifier_forward(x_nchw, w_conv, b_conv, w_head, b_head,
                            *, tile_p=128):
    B, Cin, H, W = x_nchw.shape
    P = H * W
    K, Cmid = w_conv.shape
    num_classes = w_head.shape[1]

    # ---- lane-dense padding: contraction / channel / class dims -> x128 ----
    Kp = _round_up(K, 128)
    Cp = _round_up(Cmid, 128)
    Np = _round_up(num_classes, 128)

    # ---- tile sizes (kept well under a 32 MiB scoped-VMEM budget, v7x-safe) --
    TB = B if B <= 8 else 8
    assert B % TB == 0, "batch must divide the batch tile"
    TP = min(tile_p, P)
    assert P % TP == 0, "spatial extent must divide the spatial tile"

    # layout: NCHW -> NHWC, im2col, zero-pad contraction dim, cast to bf16.
    x_nhwc = jnp.transpose(x_nchw, (0, 2, 3, 1))
    patches = im2col_3x3_same(x_nhwc)                               # (B, P, K) f32
    patches = jnp.pad(patches, ((0, 0), (0, 0), (0, Kp - K))).astype(jnp.bfloat16)

    w_conv_p = jnp.pad(w_conv, ((0, Kp - K), (0, Cp - Cmid))).astype(jnp.bfloat16)
    b_conv_p = jnp.pad(b_conv, ((0, 0), (0, Cp - Cmid))).astype(jnp.float32)
    w_head_p = jnp.pad(w_head, ((0, Cp - Cmid),
                                (0, Np - num_classes))).astype(jnp.bfloat16)
    b_head_p = jnp.pad(b_head, ((0, 0), (0, Np - num_classes))).astype(jnp.float32)

    grid = (B // TB, P // TP)
    kernel = functools.partial(classifier_kernel, inv_p=1.0 / P)

    logits_padded = pl.pallas_call(
        kernel,
        out_shape=jax.ShapeDtypeStruct((B, Np), jnp.float32),
        grid_spec=pltpu.PrefetchScalarGridSpec(
            num_scalar_prefetch=0,
            grid=grid,
            in_specs=[
                pl.BlockSpec((TB, TP, Kp), lambda bi, pi: (bi, pi, 0)),
                pl.BlockSpec((Kp, Cp),     lambda bi, pi: (0, 0)),
                pl.BlockSpec((1, Cp),      lambda bi, pi: (0, 0)),
                pl.BlockSpec((Cp, Np),     lambda bi, pi: (0, 0)),
                pl.BlockSpec((1, Np),      lambda bi, pi: (0, 0)),
            ],
            out_specs=pl.BlockSpec((TB, Np), lambda bi, pi: (bi, 0)),
            scratch_shapes=[pltpu.VMEM((TB, Cp), jnp.float32)],
        ),
        compiler_params=pltpu.CompilerParams(
            dimension_semantics=("parallel", "arbitrary"),
            vmem_limit_bytes=32 * 1024 * 1024,
        ),
    )(patches, w_conv_p, b_conv_p, w_head_p, b_head_p)

    # Padded classes are exact zeros; slice back to the real class count.
    return logits_padded[:, :num_classes]


if __name__ == "__main__":
    # Small shapes consistent with a classifier forward.
    B, Cin, H, W = 2, 4, 16, 16
    Cmid = 32            # backbone output channels ("hidden")
    NUM_CLASSES = 10

    key = jax.random.PRNGKey(0)
    kx, kw1, kb1, kw2, kb2 = jax.random.split(key, 5)

    x = jax.random.normal(kx, (B, Cin, H, W), dtype=jnp.float32)

    # Deterministic synthetic parameters (no checkpoint loading).
    w_conv = jax.random.normal(kw1, (3 * 3 * Cin, Cmid), jnp.float32) * 0.1
    b_conv = jax.random.normal(kb1, (1, Cmid), jnp.float32) * 0.01
    w_head = jax.random.normal(kw2, (Cmid, NUM_CLASSES), jnp.float32) * 0.1
    b_head = jax.random.normal(kb2, (1, NUM_CLASSES), jnp.float32) * 0.01

    logits = jax.jit(base_classifier_forward)(x, w_conv, b_conv, w_head, b_head)
    logits = jax.block_until_ready(logits)

    # Pure-JAX reference with the same bf16-operand / f32-accumulate math.
    patches_ref = im2col_3x3_same(
        jnp.transpose(x, (0, 2, 3, 1))).astype(jnp.bfloat16)
    feat_ref = jnp.einsum("bpk,kc->bpc", patches_ref,
                          w_conv.astype(jnp.bfloat16),
                          preferred_element_type=jnp.float32)
    feat_ref = jnp.maximum(feat_ref + b_conv, 0.0)
    pooled_ref = jnp.mean(feat_ref, axis=1).astype(jnp.bfloat16)
    ref = jnp.dot(pooled_ref, w_head.astype(jnp.bfloat16),
                  preferred_element_type=jnp.float32) + b_head

    assert logits.shape == (B, NUM_CLASSES)
    assert jnp.allclose(logits, ref, atol=5e-3, rtol=5e-3), (
        float(jnp.max(jnp.abs(logits - ref))))

    print("KERNEL_OK")
</pallas_src>

<mosaic_0001>
module attributes {stable_mosaic.version = 11 : i64} {
  func.func @classifier_kernel(%arg0: i32, %arg1: i32, %arg2: memref<2x128x128xbf16, #tpu.memory_space<vmem>>, %arg3: memref<128x128xbf16, #tpu.memory_space<vmem>>, %arg4: memref<1x128xf32, #tpu.memory_space<vmem>>, %arg5: memref<128x128xbf16, #tpu.memory_space<vmem>>, %arg6: memref<1x128xf32, #tpu.memory_space<vmem>>, %arg7: memref<2x128xf32, #tpu.memory_space<vmem>>, %arg8: memref<2x128xf32, #tpu.memory_space<vmem>>) attributes {dimension_semantics = [#tpu.dimension_semantics<parallel>, #tpu.dimension_semantics<arbitrary>], iteration_bounds = array<i64: 1, 2>, scalar_prefetch = 0 : i64, scratch_operands = 1 : i64, tpu.core_type = #tpu.core_type<tc>, window_params = [{transform_indices = @transform_0, window_bounds = array<i64: 2, 128, 128>}, {pipeline_mode = #tpu.pipeline_mode<synchronous>, transform_indices = @transform_1, window_bounds = array<i64: 128, 128>}, {pipeline_mode = #tpu.pipeline_mode<synchronous>, transform_indices = @transform_2, window_bounds = array<i64: 1, 128>}, {pipeline_mode = #tpu.pipeline_mode<synchronous>, transform_indices = @transform_3, window_bounds = array<i64: 128, 128>}, {pipeline_mode = #tpu.pipeline_mode<synchronous>, transform_indices = @transform_4, window_bounds = array<i64: 1, 128>}, {transform_indices = @transform_5, window_bounds = array<i64: 2, 128>}]} {
    %c0_i32 = arith.constant 0 : i32
    %0 = arith.cmpi eq, %arg1, %c0_i32 : i32
    %1 = arith.extui %0 : i1 to i32
    %c0_i32_0 = arith.constant 0 : i32
    %2 = arith.cmpi ne, %1, %c0_i32_0 : i32
    scf.if %2 {
      %cst_14 = arith.constant 0.000000e+00 : f32
      %20 = vector.broadcast %cst_14 : f32 to vector<2x128xf32>
      %c0_15 = arith.constant 0 : index
      %c0_16 = arith.constant 0 : index
      %21 = vector.load %arg8[%c0_15, %c0_16] : memref<2x128xf32, #tpu.memory_space<vmem>>, vector<2x128xf32>
      tpu.vector_store %arg8[%c0_15, %c0_16], %20 {strides = array<i32>} : memref<2x128xf32, #tpu.memory_space<vmem>>, vector<2x128xf32>,
    } else {
    }
    %c0 = arith.constant 0 : index
    %c0_1 = arith.constant 0 : index
    %c0_2 = arith.constant 0 : index
    %3 = vector.load %arg2[%c0, %c0_1, %c0_2] : memref<2x128x128xbf16, #tpu.memory_space<vmem>>, vector<2x128x128xbf16>
    %4 = vector.shape_cast %3 : vector<2x128x128xbf16> to vector<256x128xbf16>
    %c0_3 = arith.constant 0 : index
    %c0_4 = arith.constant 0 : index
    %5 = vector.load %arg3[%c0_3, %c0_4] : memref<128x128xbf16, #tpu.memory_space<vmem>>, vector<128x128xbf16>
    %cst = arith.constant dense<0.000000e+00> : vector<256x128xf32>
    %6 = tpu.matmul %4, %5, %cst {dimension_numbers = #tpu.dot_dimension_numbers<[1], [0], [0], [1], [0, 0, 1, 1], [], []>} : vector<256x128xbf16>, vector<128x128xbf16>, vector<256x128xf32> -> vector<256x128xf32>
    %c0_5 = arith.constant 0 : index
    %c0_6 = arith.constant 0 : index
    %7 = vector.load %arg4[%c0_5, %c0_6] : memref<1x128xf32, #tpu.memory_space<vmem>>, vector<1x128xf32>
    %8 = vector.broadcast %7 : vector<1x128xf32> to vector<256x128xf32>
    %9 = arith.addf %6, %8 : vector<256x128xf32>
    %cst_7 = arith.constant 0.000000e+00 : f32
    %10 = vector.broadcast %cst_7 : f32 to vector<256x128xf32>
    %11 = arith.maximumf %9, %10 : vector<256x128xf32>
    %c0_8 = arith.constant 0 : index
    %c0_9 = arith.constant 0 : index
    %12 = vector.load %arg8[%c0_8, %c0_9] : memref<2x128xf32, #tpu.memory_space<vmem>>, vector<2x128xf32>
    %13 = vector.shape_cast %11 : vector<256x128xf32> to vector<2x128x128xf32>
    %cst_10 = arith.constant dense<0.000000e+00> : vector<2x128xf32>
    %14 = vector.multi_reduction <add>, %13, %cst_10 [1] : vector<2x128x128xf32> to vector<2x128xf32>
    %15 = arith.addf %12, %14 : vector<2x128xf32>
    %c0_11 = arith.constant 0 : index
    %c0_12 = arith.constant 0 : index
    %16 = vector.load %arg8[%c0_11, %c0_12] : memref<2x128xf32, #tpu.memory_space<vmem>>, vector<2x128xf32>
    tpu.vector_store %arg8[%c0_11, %c0_12], %15 {strides = array<i32>} : memref<2x128xf32, #tpu.memory_space<vmem>>, vector<2x128xf32>,
    %c1_i32 = arith.constant 1 : i32
    %17 = arith.cmpi eq, %arg1, %c1_i32 : i32
    %18 = arith.extui %17 : i1 to i32
    %c0_i32_13 = arith.constant 0 : i32
    %19 = arith.cmpi ne, %18, %c0_i32_13 : i32
    scf.if %19 {
      %c0_14 = arith.constant 0 : index
      %c0_15 = arith.constant 0 : index
      %20 = vector.load %arg8[%c0_14, %c0_15] : memref<2x128xf32, #tpu.memory_space<vmem>>, vector<2x128xf32>
      %cst_16 = arith.constant 3.906250e-03 : f32
      %21 = vector.broadcast %cst_16 : f32 to vector<2x128xf32>
      %22 = arith.mulf %20, %21 : vector<2x128xf32>
      %23 = arith.truncf %22 : vector<2x128xf32> to vector<2x128xbf16>
      %c0_17 = arith.constant 0 : index
      %c0_18 = arith.constant 0 : index
      %24 = vector.load %arg5[%c0_17, %c0_18] : memref<128x128xbf16, #tpu.memory_space<vmem>>, vector<128x128xbf16>
      %cst_19 = arith.constant dense<0.000000e+00> : vector<2x128xf32>
      %25 = tpu.matmul %23, %24, %cst_19 {dimension_numbers = #tpu.dot_dimension_numbers<[1], [0], [0], [1], [0, 0, 1, 1], [], []>} : vector<2x128xbf16>, vector<128x128xbf16>, vector<2x128xf32> -> vector<2x128xf32>
      %c0_20 = arith.constant 0 : index
      %c0_21 = arith.constant 0 : index
      %26 = vector.load %arg6[%c0_20, %c0_21] : memref<1x128xf32, #tpu.memory_space<vmem>>, vector<1x128xf32>
      %27 = vector.broadcast %26 : vector<1x128xf32> to vector<2x128xf32>
      %28 = arith.addf %25, %27 : vector<2x128xf32>
      %c0_22 = arith.constant 0 : index
      %c0_23 = arith.constant 0 : index
      %29 = vector.load %arg7[%c0_22, %c0_23] : memref<2x128xf32, #tpu.memory_space<vmem>>, vector<2x128xf32>
      tpu.vector_store %arg7[%c0_22, %c0_23], %28 {strides = array<i32>} : memref<2x128xf32, #tpu.memory_space<vmem>>, vector<2x128xf32>,
    } else {
    }
    return
  }
  func.func @transform_0(%arg0: i32, %arg1: i32) -> (i32, i32, i32) {
    %c0_i32 = arith.constant 0 : i32
    %c0_i32_0 = arith.constant 0 : i32
    return %arg0, %arg1, %c0_i32 : i32, i32, i32
  }
  func.func @transform_1(%arg0: i32, %arg1: i32) -> (i32, i32) {
    %c0_i32 = arith.constant 0 : i32
    %c0_i32_0 = arith.constant 0 : i32
    %c0_i32_1 = arith.constant 0 : i32
    return %c0_i32, %c0_i32_0 : i32, i32
  }
  func.func @transform_2(%arg0: i32, %arg1: i32) -> (i32, i32) {
    %c0_i32 = arith.constant 0 : i32
    %c0_i32_0 = arith.constant 0 : i32
    %c0_i32_1 = arith.constant 0 : i32
    return %c0_i32, %c0_i32_0 : i32, i32
  }
  func.func @transform_3(%arg0: i32, %arg1: i32) -> (i32, i32) {
    %c0_i32 = arith.constant 0 : i32
    %c0_i32_0 = arith.constant 0 : i32
    %c0_i32_1 = arith.constant 0 : i32
    return %c0_i32, %c0_i32_0 : i32, i32
  }
  func.func @transform_4(%arg0: i32, %arg1: i32) -> (i32, i32) {
    %c0_i32 = arith.constant 0 : i32
    %c0_i32_0 = arith.constant 0 : i32
    %c0_i32_1 = arith.constant 0 : i32
    return %c0_i32, %c0_i32_0 : i32, i32
  }
  func.func @transform_5(%arg0: i32, %arg1: i32) -> (i32, i32) {
    %c0_i32 = arith.constant 0 : i32
    %c0_i32_0 = arith.constant 0 : i32
    return %arg0, %c0_i32 : i32, i32
  }
}

</mosaic_0001>

<bundles_post_ra>
// kernel: base_classifier_forward.1
= control target key start
LH: loop header
LB: loop body
LE: loop exit
PB: predicated region body
PF: predicated region fallthrough
CT: control target
= control target key end

     0   :  { %10 = vsyncpa [#allocation5], 0  ;;  %s1388_s18 = smov 0   ;;  %s1390_s19 = smov 0   ;;  %s1593_s0 = inlined_call_operand.vmem [shape: bf16[2,256,128], index: 0, kind: input, shape index: {}]   ;;  %s1594_s1 = inlined_call_operand.vmem [shape: bf16[128,128], index: 1, kind: input, shape index: {}]   ;;  %s1595_s2 = inlined_call_operand.vmem [shape: f32[1,128], index: 2, kind: input, shape index: {}]   ;;  %s1596_s3 = inlined_call_operand.vmem [shape: bf16[128,128], index: 3, kind: input, shape index: {}]   ;;  %s1597_s4 = inlined_call_operand.vmem [shape: f32[1,128], index: 4, kind: input, shape index: {}]   ;;  %s1598_s5 = inlined_call_operand.hbm [shape: f32[2,128], index: 5, kind: output, shape index: {}]  }
   0x1   :  { %s1392_s20 = smov 0   ;;  %s1394_s21 = smov 0  }
   0x2   :  { %s1396_s22 = smov 0  }
   0x3 LB: > { %s1038_s23 = sadd.s32 4294967295, %s1352_s22   ;;  %s25_s24 = sadd.s32 1, %s1348_s21  ;;  %s1352_s22 = sphi %s1396_s22, %s16_s22   ;;  %s1348_s21 = sphi %s1394_s21, %s1603_s21   ;;  %s1344_s20 = sphi %s1392_s20, %s1602_s20   ;;  %s1340_s19 = sphi %s1390_s19, %s1601_s19   ;;  %s1336_s18 = sphi %s1388_s18, %s1600_s18  }
   0x4   : > { %p26_p0 = scmp.ge.s32.totalorder %s25_s24, 2  ;;  %p44_p1 = scmp.ne.s32.totalorder %s1340_s19, %s1336_s18 }
   0x5   : > { %p45_p2 = scmp.eq.s32.totalorder %s1352_s22, 0  ;;  %s37_s26 = sadd.s32 1, %s1340_s19 }
   0x6   : > { %s1605_s24 = smov (%p26_p0, %s25_s24), 0  ;;  %p1040_p5 = scmp.ge.s32.totalorder %s1352_s22, 2 }
   0x7   : > { %p46_p3 = por %p45_p2, %p44_p1  ;;  %s33_s25 = ssub.s32 %s1348_s21, %s1605_s24 }
   0x8   : > { %p35_p4 = scmp.eq.s32.totalorder %s33_s25, 0  ;;  %192 = sbr.rel (%p1040_p5) target bundleno = 25 (0x19), region = 32 }
   0xa   : > { %s1424_s27 = scalar_select %p35_p4, %s1340_s19, %s37_s26  }
   0xd   : > { %195 = sbr.rel (!%p46_p3) target bundleno = 25 (0x19), region = 36  ;;  %s197_s28 = sand.u32 (%p46_p3), 1, %s1340_s19  }
   0xe   : > { %s1086_s29 = sshll.u32 (%p46_p3), %s1348_s21, 6  ;;  %s1041_s30 = sshll.u32 (%p46_p3), %s197_s28, 7 }
   0xf   : > { %s1432_s8 = scalar_lea.vmem (%p46_p3), %s1593_s0, %s1086_s29  ;;  %s199_s9 = scalar_lea.vmem (%p46_p3), [#allocation3], %s1041_s30 }
  0x10   : > { %v222_v0 = vld [vmem:[%s1432_s8] sm:$0xff] (%p46_p3)   ;;  %v226_v1 = vld [vmem:[%s1432_s8 + $0x8] sm:$0xff] (%p46_p3)   ;;  %v230_v2 = vld [vmem:[%s1432_s8 + $0x10] sm:$0xff] (%p46_p3)  }
  0x11   : > { %223 = vst [vmem:[%s199_s9] sm:$0xff] (%p46_p3), %v222_v0   ;;  %227 = vst [vmem:[%s199_s9 + $0x8] sm:$0xff] (%p46_p3), %v226_v1   ;;  %v234_v3 = vld [vmem:[%s1432_s8 + $0x18] sm:$0xff] (%p46_p3)   ;;  %v238_v4 = vld [vmem:[%s1432_s8 + $0x20] sm:$0xff] (%p46_p3)  }
  0x12   : > { %231 = vst [vmem:[%s199_s9 + $0x10] sm:$0xff] %v230_v2   ;;  %v242_v5 = vld [vmem:[%s1432_s8 + $0x28] sm:$0xff]   ;;  %235 = vst [vmem:[%s199_s9 + $0x18] sm:$0xff] %v234_v3   ;;  %v246_v6 = vld [vmem:[%s1432_s8 + $0x30] sm:$0xff]  }
  0x13   : > { %239 = vst [vmem:[%s199_s9 + $0x20] sm:$0xff] %v238_v4   ;;  %243 = vst [vmem:[%s199_s9 + $0x28] sm:$0xff] %v242_v5   ;;  %v250_v7 = vld [vmem:[%s1432_s8 + $0x38] sm:$0xff]   ;;  %v254_v8 = vld [vmem:[%s1432_s8 + $0x80] sm:$0xff]  }
  0x14   : > { %247 = vst [vmem:[%s199_s9 + $0x30] sm:$0xff] %v246_v6   ;;  %251 = vst [vmem:[%s199_s9 + $0x38] sm:$0xff] %v250_v7   ;;  %v258_v9 = vld [vmem:[%s1432_s8 + $0x88] sm:$0xff]   ;;  %v262_v10 = vld [vmem:[%s1432_s8 + $0x90] sm:$0xff]  }
  0x15   : > { %255 = vst [vmem:[%s199_s9 + $0x40] sm:$0xff] %v254_v8   ;;  %v266_v11 = vld [vmem:[%s1432_s8 + $0x98] sm:$0xff]   ;;  %259 = vst [vmem:[%s199_s9 + $0x48] sm:$0xff] %v258_v9   ;;  %v270_v12 = vld [vmem:[%s1432_s8 + $0xa0] sm:$0xff]  }
  0x16   : > { %263 = vst [vmem:[%s199_s9 + $0x50] sm:$0xff] %v262_v10   ;;  %267 = vst [vmem:[%s199_s9 + $0x58] sm:$0xff] %v266_v11   ;;  %v274_v13 = vld [vmem:[%s1432_s8 + $0xa8] sm:$0xff]   ;;  %v278_v14 = vld [vmem:[%s1432_s8 + $0xb0] sm:$0xff]  }
  0x17   : > { %271 = vst [vmem:[%s199_s9 + $0x60] sm:$0xff] %v270_v12   ;;  %275 = vst [vmem:[%s199_s9 + $0x68] sm:$0xff] %v274_v13   ;;  %v282_v15 = vld [vmem:[%s1432_s8 + $0xb8] sm:$0xff]  }
  0x18   : > { %279 = vst [vmem:[%s199_s9 + $0x70] sm:$0xff] %v278_v14   ;;  %283 = vst [vmem:[%s199_s9 + $0x78] sm:$0xff] %v282_v15  }
  0x19 PF: > { %p1044_p6 = scmp.ge.s32.totalorder %s1352_s22, 1  ;;  %p372_p7 = scmp.lt.s32.totalorder %s1352_s22, 3 }
  0x1b   : > { %p373_p8 = pnand %p1044_p6, %p372_p7 }
  0x1c   : > { %s379_s10 = sand.u32 (!%p373_p8), 1, %s1336_s18   ;;  %p1046_p9 = scmp.ne.s32.totalorder (!%p373_p8), %s1344_s20, 0 }
  0x1d   : > { %376 = sbr.rel (%p373_p8) target bundleno = 570 (0x23a), region = 77  ;;  %s1045_s11 = sshll.u32 (!%p373_p8), %s379_s10, 7 }
  0x1e   : > { %s1453_s12 = scalar_lea.vmem (!%p373_p8), [#allocation3], %s1045_s11 }
  0x22   : > { %407 = sbr.rel (%p1046_p9) target bundleno = 41 (0x29), region = 85 }
  0x27   : > { %v1354_v16 = vmov 0.0  }
  0x28   : > { %408 = vst [vmem:[#allocation2] sm:$0x3] %v1354_v16 }
  0x29 PF: > { %v1254_v17 = vld [vmem:[%s1594_s1 + $0x38] sm:$0xff]   ;;  %v1255_v18 = vld [vmem:[%s1594_s1 + $0x30] sm:$0xff]   ;;  %v1256_v19 = vld [vmem:[%s1594_s1 + $0x28] sm:$0xff]   ;;  %vm846_vm0 = vcmask 1041409   ;;  %p1072_p10 = scmp.ne.s32.totalorder %s1344_s20, 1 }
  0x2a   : > { %1120 = vmatprep.subr.bf16.mxu0 %v1254_v17  ;;  %1188 = vmatprep.subr.bf16.mxu1 %v1254_v17  ;;  %v1257_v20 = vld [vmem:[%s1594_s1 + $0x20] sm:$0xff]   ;;  %v1258_v23 = vld [vmem:[%s1594_s1 + $0x18] sm:$0xff]   ;;  %v1259_v24 = vld [vmem:[%s1594_s1 + $0x10] sm:$0xff]  }
  0x2b   : > { %1121 = vmatpush3.bf16.msra.mxu0 %v1254_v17  ;;  %1196 = vmatpush3.bf16.msra.mxu1 %v1254_v17  ;;  %v1262_v21 = vld [vmem:[%s1453_s12] sm:$0xff]   ;;  %v1264_v27 = vld [vmem:[%s1453_s12 + $0x8] sm:$0xff]   ;;  %v1266_v29 = vld [vmem:[%s1453_s12 + $0x10] sm:$0xff]  }
  0x2c   : > { %1122 = vmatprep.subr.bf16.mxu0 %v1255_v18  ;;  %1189 = vmatprep.subr.bf16.mxu1 %v1255_v18  ;;  %v1263_v22 = vld [vmem:[%s1453_s12 + $0x40] sm:$0xff]   ;;  %v1265_v28 = vld [vmem:[%s1453_s12 + $0x48] sm:$0xff]   ;;  %v1267_v30 = vld [vmem:[%s1453_s12 + $0x50] sm:$0xff]  }
  0x2d   : > { %1136 = vmatprep.mubr.bf16.mxu0 %v1262_v21  ;;  %1152 = vmatprep.mubr.bf16.mxu1 %v1263_v22  ;;  %v1260_v25 = vld [vmem:[%s1594_s1 + $0x8] sm:$0xff]   ;;  %v1261_v26 = vld [vmem:[%s1594_s1] sm:$0xff]   ;;  %v1274_v37 = vld [vmem:[%s1453_s12 + $0x30] sm:$0xff]  }
  0x2e   : > { %v1268_v31 = vld [vmem:[%s1453_s12 + $0x18] sm:$0xff]   ;;  %v1270_v33 = vld [vmem:[%s1453_s12 + $0x20] sm:$0xff]   ;;  %v1272_v35 = vld [vmem:[%s1453_s12 + $0x28] sm:$0xff]  }
  0x2f   : > { %1123 = vmatpush3.bf16.msra.mxu0 %v1255_v18  ;;  %1197 = vmatpush3.bf16.msra.mxu1 %v1255_v18  ;;  %v1269_v32 = vld [vmem:[%s1453_s12 + $0x58] sm:$0xff]   ;;  %v1271_v34 = vld [vmem:[%s1453_s12 + $0x60] sm:$0xff]   ;;  %v1273_v36 = vld [vmem:[%s1453_s12 + $0x68] sm:$0xff]  }
  0x30   : > { %1124 = vmatprep.subr.bf16.mxu0 %v1256_v19  ;;  %1190 = vmatprep.subr.bf16.mxu1 %v1256_v19  ;;  %v1275_v38 = vld [vmem:[%s1453_s12 + $0x70] sm:$0xff]   ;;  %v1276_v39 = vld [vmem:[%s1453_s12 + $0x38] sm:$0xff]  }
  0x31   : > { %v1277_v40 = vld [vmem:[%s1453_s12 + $0x78] sm:$0xff]  }
  0x32   : > { %v1499_v45 = vld [vmem:[%s1595_s2] ss:$0 sm:$0xff] }
  0x33   : > { %1125 = vmatpush3.bf16.msra.mxu0 %v1256_v19  ;;  %1198 = vmatpush3.bf16.msra.mxu1 %v1256_v19 }
  0x34   : > { %1126 = vmatprep.subr.bf16.mxu0 %v1257_v20  ;;  %1191 = vmatprep.subr.bf16.mxu1 %v1257_v20 }
  0x37   : > { %1127 = vmatpush3.bf16.msra.mxu0 %v1257_v20  ;;  %1199 = vmatpush3.bf16.msra.mxu1 %v1257_v20 }
  0x38   : > { %1128 = vmatprep.subr.bf16.mxu0 %v1258_v23  ;;  %1192 = vmatprep.subr.bf16.mxu1 %v1258_v23 }
  0x3b   : > { %1129 = vmatpush3.bf16.msra.mxu0 %v1258_v23  ;;  %1200 = vmatpush3.bf16.msra.mxu1 %v1258_v23 }
  0x3c   : > { %1130 = vmatprep.subr.bf16.mxu0 %v1259_v24  ;;  %1193 = vmatprep.subr.bf16.mxu1 %v1259_v24 }
  0x3f   : > { %1131 = vmatpush3.bf16.msra.mxu0 %v1259_v24  ;;  %1201 = vmatpush3.bf16.msra.mxu1 %v1259_v24 }
  0x40   : > { %1132 = vmatprep.subr.bf16.mxu0 %v1260_v25  ;;  %1194 = vmatprep.subr.bf16.mxu1 %v1260_v25 }
  0x43   : > { %1133 = vmatpush3.bf16.msra.mxu0 %v1260_v25  ;;  %1202 = vmatpush3.bf16.msra.mxu1 %v1260_v25 }
  0x44   : > { %1134 = vmatprep.subr.bf16.mxu0 %v1261_v26  ;;  %1195 = vmatprep.subr.bf16.mxu1 %v1261_v26 }
  0x47   : > { %1135 = vmatpush3.bf16.msra.mxu0 %v1261_v26  ;;  %1203 = vmatpush3.bf16.msra.mxu1 %v1261_v26 }
  0x4a   : > { %1137 = vmatmul.mubr.bf16.vlgmr.msra.gmra.mxu0 %v1264_v27  ;;  %1153 = vmatmul.mubr.bf16.vlgmr.msra.gmra.mxu1 %v1265_v28 }
  0x4b   : > { %1140 = vmatprep.mubr.bf16.mxu0 %v1266_v29  ;;  %1156 = vmatprep.mubr.bf16.mxu1 %v1267_v30 }
  0x52   : > { %1141 = vmatmul.mubr.bf16.gmra.mxu0 %v1268_v31  ;;  %1157 = vmatmul.mubr.bf16.gmra.mxu1 %v1269_v32 }
  0x53   : > { %1144 = vmatprep.mubr.bf16.mxu0 %v1270_v33  ;;  %1160 = vmatprep.mubr.bf16.mxu1 %v1271_v34 }
  0x5a   : > { %1145 = vmatmul.mubr.bf16.gmra.mxu0 %v1272_v35  ;;  %1161 = vmatmul.mubr.bf16.gmra.mxu1 %v1273_v36 }
  0x5b   : > { %1148 = vmatprep.mubr.bf16.mxu0 %v1274_v37  ;;  %1164 = vmatprep.mubr.bf16.mxu1 %v1275_v38 }
  0x62   : > { %1149 = vmatmul.mubr.bf16.gmra.mxu0 %v1276_v39  ;;  %1165 = vmatmul.mubr.bf16.gmra.mxu1 %v1277_v40 }
 0x10a   : > { %v1138_v41 = vpop.f32.mrf.mxu0  ;;  %v1154_v42 = vpop.f32.mrf.mxu1 }
 0x10b   : > { %v651_v52 = vadd.f32 %v1138_v41, %v1499_v45  ;;  %v715_v53 = vadd.f32 %v1154_v42, %v1499_v45 }
 0x10c   : > { %v642_v43 = vpop.f32.mrf.mxu0  ;;  %v706_v44 = vpop.f32.mrf.mxu1 }
 0x10d   : > { %v643_v46 = vadd.f32 %v1499_v45, %v642_v43  ;;  %v707_v47 = vadd.f32 %v1499_v45, %v706_v44  ;;  %v771_v2 = vmax.f32 %v651_v52, 0.0  ;;  %v787_v3 = vmax.f32 %v715_v53, 0.0 }
 0x10e   : > { %v1139_v48 = vpop.f32.mrf.mxu0  ;;  %v1155_v49 = vpop.f32.mrf.mxu1 }
 0x10f   : > { %v769_v56 = vmax.f32 %v643_v46, 0.0  ;;  %v785_v57 = vmax.f32 %v707_v47, 0.0  ;;  %v654_v60 = vadd.f32 %v1139_v48, %v1499_v45  ;;  %v718_v61 = vadd.f32 %v1155_v49, %v1499_v45 }
 0x110   : > { %v645_v50 = vpop.f32.mrf.mxu0  ;;  %v709_v51 = vpop.f32.mrf.mxu1 }
 0x111   : > { %v646_v54 = vadd.f32 %v1499_v45, %v645_v50  ;;  %v710_v55 = vadd.f32 %v1499_v45, %v709_v51  ;;  %v772_v10 = vmax.f32 %v654_v60, 0.0  ;;  %v788_v11 = vmax.f32 %v718_v61, 0.0 }
 0x112   : > { %v1142_v58 = vpop.f32.mrf.mxu0  ;;  %v1158_v59 = vpop.f32.mrf.mxu1 }
 0x113   : > { %v770_v62 = vmax.f32 %v646_v54, 0.0  ;;  %v786_v63 = vmax.f32 %v710_v55, 0.0  ;;  %v667_v14 = vadd.f32 %v1142_v58, %v1499_v45  ;;  %v731_v15 = vadd.f32 %v1158_v59, %v1499_v45 }
 0x114   : > { %v658_v0 = vpop.f32.mrf.mxu0  ;;  %v722_v1 = vpop.f32.mrf.mxu1 }
 0x115   : > { %v802_v4 = vadd.f32 %v770_v62, %v769_v56  ;;  %v823_v5 = vadd.f32 %v786_v63, %v785_v57  ;;  %v659_v6 = vadd.f32 %v1499_v45, %v658_v0  ;;  %v723_v7 = vadd.f32 %v1499_v45, %v722_v1 }
 0x116   : > { %v1143_v8 = vpop.f32.mrf.mxu0  ;;  %v1159_v9 = vpop.f32.mrf.mxu1  ;;  %v775_v34 = vmax.f32 %v667_v14, 0.0  ;;  %v791_v35 = vmax.f32 %v731_v15, 0.0 }
 0x117   : > { %v803_v12 = vadd.f32 %v802_v4, %v771_v2  ;;  %v824_v13 = vadd.f32 %v823_v5, %v787_v3  ;;  %v773_v18 = vmax.f32 %v659_v6, 0.0  ;;  %v789_v20 = vmax.f32 %v723_v7, 0.0 }
 0x118   : > { %v661_v16 = vpop.f32.mrf.mxu0  ;;  %v725_v17 = vpop.f32.mrf.mxu1  ;;  %v670_v28 = vadd.f32 %v1143_v8, %v1499_v45  ;;  %v734_v29 = vadd.f32 %v1159_v9, %v1499_v45 }
 0x119   : > { %v804_v19 = vadd.f32 %v803_v12, %v772_v10  ;;  %v825_v21 = vadd.f32 %v824_v13, %v788_v11  ;;  %v662_v22 = vadd.f32 %v1499_v45, %v661_v16  ;;  %v726_v23 = vadd.f32 %v1499_v45, %v725_v17 }
 0x11a   : > { %v1146_v24 = vpop.f32.mrf.mxu0  ;;  %v1162_v25 = vpop.f32.mrf.mxu1  ;;  %v776_v42 = vmax.f32 %v670_v28, 0.0  ;;  %v792_v43 = vmax.f32 %v734_v29, 0.0 }
 0x11b   : > { %v805_v26 = vadd.f32 %v804_v19, %v773_v18  ;;  %v826_v27 = vadd.f32 %v825_v21, %v789_v20  ;;  %v774_v30 = vmax.f32 %v662_v22, 0.0  ;;  %v790_v31 = vmax.f32 %v726_v23, 0.0 }
 0x11c   : > { %v674_v32 = vpop.f32.mrf.mxu0  ;;  %v738_v33 = vpop.f32.mrf.mxu1  ;;  %v683_v49 = vadd.f32 %v1146_v24, %v1499_v45  ;;  %v747_v50 = vadd.f32 %v1162_v25, %v1499_v45 }
 0x11d   : > { %v806_v36 = vadd.f32 %v805_v26, %v774_v30  ;;  %v827_v37 = vadd.f32 %v826_v27, %v790_v31  ;;  %v675_v38 = vadd.f32 %v1499_v45, %v674_v32  ;;  %v739_v39 = vadd.f32 %v1499_v45, %v738_v33 }
 0x11e   : > { %v1147_v40 = vpop.f32.mrf.mxu0  ;;  %v1163_v41 = vpop.f32.mrf.mxu1  ;;  %v779_v3 = vmax.f32 %v683_v49, 0.0  ;;  %v795_v4 = vmax.f32 %v747_v50, 0.0 }
 0x11f   : > { %v807_v44 = vadd.f32 %v806_v36, %v775_v34  ;;  %v828_v46 = vadd.f32 %v827_v37, %v791_v35  ;;  %v777_v53 = vmax.f32 %v675_v38, 0.0  ;;  %v793_v55 = vmax.f32 %v739_v39, 0.0 }
 0x120   : > { %v677_v47 = vpop.f32.mrf.mxu0  ;;  %v741_v48 = vpop.f32.mrf.mxu1  ;;  %v686_v63 = vadd.f32 %v1147_v40, %v1499_v45  ;;  %v750_v0 = vadd.f32 %v1163_v41, %v1499_v45 }
 0x121   : > { %v678_v51 = vadd.f32 %v1499_v45, %v677_v47  ;;  %v742_v52 = vadd.f32 %v1499_v45, %v741_v48  ;;  %v808_v54 = vadd.f32 %v807_v44, %v776_v42  ;;  %v829_v56 = vadd.f32 %v828_v46, %v792_v43 }
 0x122   : > { %v1150_v57 = vpop.f32.mrf.mxu0  ;;  %v1166_v58 = vpop.f32.mrf.mxu1  ;;  %v780_v11 = vmax.f32 %v686_v63, 0.0  ;;  %v796_v12 = vmax.f32 %v750_v0, 0.0 }
 0x123   : > { %v778_v59 = vmax.f32 %v678_v51, 0.0  ;;  %v794_v60 = vmax.f32 %v742_v52, 0.0  ;;  %v809_v61 = vadd.f32 %v808_v54, %v777_v53  ;;  %v830_v62 = vadd.f32 %v829_v56, %v793_v55  ;;  %v801_v52 = vld [vmem:[#allocation2] sm:$0x3] }
 0x124   : > { %v690_v1 = vpop.f32.mrf.mxu0  ;;  %v754_v2 = vpop.f32.mrf.mxu1  ;;  %v699_v17 = vadd.f32 %v1150_v57, %v1499_v45  ;;  %v763_v18 = vadd.f32 %v1166_v58, %v1499_v45 }
 0x125   : > { %v810_v5 = vadd.f32 %v809_v61, %v778_v59  ;;  %v831_v6 = vadd.f32 %v830_v62, %v794_v60  ;;  %v691_v7 = vadd.f32 %v1499_v45, %v690_v1  ;;  %v755_v8 = vadd.f32 %v1499_v45, %v754_v2 }
 0x126   : > { %v1151_v9 = vpop.f32.mrf.mxu0  ;;  %v1167_v10 = vpop.f32.mrf.mxu1  ;;  %v783_v31 = vmax.f32 %v699_v17, 0.0  ;;  %v799_v32 = vmax.f32 %v763_v18, 0.0 }
 0x127   : > { %v811_v13 = vadd.f32 %v810_v5, %v779_v3  ;;  %v832_v14 = vadd.f32 %v831_v6, %v795_v4  ;;  %v781_v21 = vmax.f32 %v691_v7, 0.0  ;;  %v797_v23 = vmax.f32 %v755_v8, 0.0 }
 0x128   : > { %v693_v15 = vpop.f32.mrf.mxu0  ;;  %v757_v16 = vpop.f32.mrf.mxu1  ;;  %v702_v29 = vadd.f32 %v1151_v9, %v1499_v45  ;;  %v766_v30 = vadd.f32 %v1167_v10, %v1499_v45 }
 0x129   : > { %v694_v19 = vadd.f32 %v1499_v45, %v693_v15  ;;  %v758_v20 = vadd.f32 %v1499_v45, %v757_v16  ;;  %v812_v22 = vadd.f32 %v811_v13, %v780_v11  ;;  %v833_v24 = vadd.f32 %v832_v14, %v796_v12 }
 0x12a   : > { %v784_v35 = vmax.f32 %v702_v29, 0.0  ;;  %v800_v36 = vmax.f32 %v766_v30, 0.0 }
 0x12b   : > { %v782_v25 = vmax.f32 %v694_v19, 0.0  ;;  %v798_v26 = vmax.f32 %v758_v20, 0.0  ;;  %v813_v27 = vadd.f32 %v812_v22, %v781_v21  ;;  %v834_v28 = vadd.f32 %v833_v24, %v797_v23 }
 0x12d   : > { %v814_v33 = vadd.f32 %v813_v27, %v782_v25  ;;  %v835_v34 = vadd.f32 %v834_v28, %v798_v26 }
 0x12f   : > { %v815_v37 = vadd.f32 %v814_v33, %v783_v31  ;;  %v836_v38 = vadd.f32 %v835_v34, %v799_v32 }
 0x131   : > { %v816_v39 = vadd.f32 %v815_v37, %v784_v35  ;;  %v837_v40 = vadd.f32 %v836_v38, %v800_v36 }
 0x133   : > { %v817_v41 = vrot.slane %v816_v39, 4  ;;  %v838_v42 = vrot.slane %v837_v40, 4 }
 0x135   : > { %v818_v43 = vadd.f32 %v817_v41, %v816_v39  ;;  %v839_v44 = vadd.f32 %v838_v42, %v837_v40 }
 0x137   : > { %v819_v46 = vrot.slane %v818_v43, 2  ;;  %v840_v47 = vrot.slane %v839_v44, 2 }
 0x139   : > { %v820_v48 = vadd.f32 %v819_v46, %v818_v43  ;;  %v841_v49 = vadd.f32 %v840_v47, %v839_v44 }
 0x13b   : > { %v821_v50 = vrot.slane %v820_v48, 1  ;;  %v842_v45 = vrot.slane %v841_v49, 1 }
 0x13d   : > { %v822_v51 = vadd.f32 %v821_v50, %v820_v48  ;;  %v843_v53 = vadd.f32 %v842_v45, %v841_v49 }
 0x13e   : > { %854 = sbr.rel (%p1072_p10) target bundleno = 555 (0x22b), region = 89 }
 0x13f   : > { %v847_v54 = vsel %vm846_vm0, %v843_v53, %v822_v51 }
 0x140   : > { %v849_v55 = vadd.f32 %v847_v54, %v801_v52 }
 0x142   : > { %850 = vst [vmem:[#allocation2] sm:$0x3] %v849_v55 }
 0x143   : > { %v1278_v56 = vld [vmem:[%s1596_s3 + $0x38] sm:$0xff]   ;;  %v1355_v57 = vmov 0.0   ;;  %v1279_v58 = vld [vmem:[%s1596_s3 + $0x30] sm:$0xff]   ;;  %vm1356_vm1 = vmmov 0   ;;  %v1280_v59 = vld [vmem:[%s1596_s3 + $0x28] sm:$0xff]  }
 0x144   : > { %1168 = vmatprep.subr.bf16.mxu0 %v1355_v57  ;;  %1184 = vmatprep.mubr.msk.bf16.mxu0 %vm1356_vm1, %v1355_v57  ;;  %v1281_v60 = vld [vmem:[%s1596_s3 + $0x20] sm:$0xff]   ;;  %v1282_v61 = vld [vmem:[%s1596_s3 + $0x18] sm:$0xff]   ;;  %v1283_v62 = vld [vmem:[%s1596_s3 + $0x10] sm:$0xff]  }
 0x145   : > { %1169 = vmatpush3.bf16.msra.mxu0 %v1278_v56  ;;  %v1284_v63 = vld [vmem:[%s1596_s3 + $0x8] sm:$0xff]   ;;  %v1285_v2 = vld [vmem:[%s1596_s3] sm:$0xff]  }
 0x146   : > { %1170 = vmatprep.subr.bf16.mxu0 %v1355_v57  ;;  %v1073_v4 = vld [vmem:[%s1597_s4] ss:$0 sm:$0xff] }
 0x149   : > { %1171 = vmatpush3.bf16.msra.mxu0 %v1279_v58  ;;  %v855_v0 = vld [vmem:[#allocation2] sm:$0x3] }
 0x14a   : > { %1172 = vmatprep.subr.bf16.mxu0 %v1355_v57  ;;  %v856_v1 = vmul.f32 0.00390625, %v855_v0 }
 0x14c   : > { %v857_v3 = vpack.c.bf16 %v856_v1, %v856_v1 }
 0x14d   : > { %1173 = vmatpush3.bf16.msra.mxu0 %v1280_v59 }
 0x14e   : > { %1174 = vmatprep.subr.bf16.mxu0 %v1355_v57 }
 0x151   : > { %1175 = vmatpush3.bf16.msra.mxu0 %v1281_v60 }
 0x152   : > { %1176 = vmatprep.subr.bf16.mxu0 %v1355_v57 }
 0x155   : > { %1177 = vmatpush3.bf16.msra.mxu0 %v1282_v61 }
 0x156   : > { %1178 = vmatprep.subr.bf16.mxu0 %v1355_v57 }
 0x159   : > { %1179 = vmatpush3.bf16.msra.mxu0 %v1283_v62 }
 0x15a   : > { %1180 = vmatprep.subr.bf16.mxu0 %v1355_v57 }
 0x15d   : > { %1181 = vmatpush3.bf16.msra.mxu0 %v1284_v63 }
 0x15e   : > { %1182 = vmatprep.subr.bf16.mxu0 %v1355_v57 }
 0x161   : > { %1183 = vmatpush3.bf16.msra.mxu0 %v1285_v2 }
 0x164   : > { %1185 = vmatmul.mubr.bf16.vlgmr.msra.gmra.mxu0 %v857_v3 }
 0x224   : > { %v963_v5 = vpop.f32.mrf.mxu0 }
 0x225   : > { %v964_v6 = vadd.f32 %v1073_v4, %v963_v5 }
 0x226   : > { %v1186_v7 = vpop.f32.mrf.mxu0 }
 0x227   : > { %969 = vst [vmem:[#allocation4] sm:$0x3] %v964_v6 }
 0x228   : > { %v966_v8 = vpop.f32.mrf.mxu0 }
 0x22a   : > { %v1187_v9 = vpop.f32.mrf.mxu0 }
 0x22b PF: > { %p1563_p11 = scmp.eq.s32.totalorder %s1038_s23, 1  ;;  %s1357_s12 = smov [#allocation4]  }
 0x22c   : > { %s979_s14 = sshll.u32 %s1357_s12, 4  ;;  %s980_s14 = int_to_ptr.vmem [resolvable:$true] %s979_s14 }
 0x22d   : > { %s1286_s15 = scalar_lea.vmem %s980_s14, 32  ;;  %p1293_p1 = scmp.lt.s32.totalorder %s980_s14, %s980_s14 }
 0x22e   : > { %p1287_p12 = scmp.ne.s32.totalorder %s980_s14, %s1286_s15  ;;  %p1294_p2 = scmp.lt.s32.totalorder %s1286_s15, %s1286_s15 }
 0x230   : > { %p1288_p13 = pnand %p1287_p12, %p1563_p11  ;;  %p1295_p3 = por %p1294_p2, %p1293_p1 }
 0x232   : > { %p1289_p0 = pneg %p1288_p13 }
 0x234   : > { %p1296_p4 = pnand %p1295_p3, %p1289_p0 }
 0x236   : > { %1299 = shalt.err (!%p1296_p4)
}
 0x237   : > { %1205 = dma.vmem_to_hbm [thread:$0]  (%p1563_p11), %s980_s14, 32, %s1598_s5, [#allocation5]  }
 0x238   : > { %1331 = dma.done.wait (%p1563_p11), [#allocation5], 32  }
 0x239   : > { %1333 = vsyncadd (%p1563_p11), [#allocation5], 4294967264 }
 0x23a PF: > { %s16_s22 = sadd.s32 1, %s1352_s22   ;;  %s1600_s18 = smov %s1340_s19 }
 0x23b   : > { %p13_p5 = scmp.ge.s32.totalorder %s16_s22, 4   ;;  %s1601_s19 = smov %s1424_s27 }
 0x23c   : > { %s1602_s20 = smov %s1348_s21  ;;  %s1603_s21 = smov %s1605_s24 }
 0x23d   :  { %15 = sbr.rel (!%p13_p5) target bundleno = 3 (0x3), region = 122 }
 0x242   :  { %992 = vsyncpa [#allocation5], 1 }
 0x243   :  { %994 = vsyncpa [#allocation5 + $0x1], 1 }

</bundles_post_ra>
